<compile_context>
chip_gen: v5e
topology: v5e:2x2
jax: 0.10.0
libtpu: 0.0.40
codegen_flags: <defaults>
</compile_context>

<pallas_src>
import jax
import jax.numpy as jnp
from jax import lax
from jax.experimental import pallas as pl
from jax.experimental.pallas import tpu as pltpu


# ---------------------------------------------------------------------------
# Fused Pallas kernel: 1x1-conv (channel matmul) + bias + class-embed concat
# One grid step per batch element; single lane-dense store of the whole block.
# ---------------------------------------------------------------------------
def _fused_xtrain_kernel(x_ref, wg_ref, bp_ref, clsp_ref, o_ref):
    # x_ref   : (1, T, P, Cin)          one batch element, channels-last, P = H*W pixels
    #                                   (only t in [0, T-2] is used; loading the full T
    #                                   keeps the input block full-extent / unragged)
    # wg_ref  : (G, Cout//G, Cin)       conv weight regrouped: group g holds channels {G*r+g}
    # bp_ref  : (Cout//G, G*P)          conv bias pre-packed to the output row layout
    # clsp_ref: (Ccls//G, G*P)          class-embedding image pre-packed likewise
    # o_ref   : (1, (T-1)*(Cout+Ccls)//G, G*P)
    #           row-major flatten of x_train[b] = (T-1, Cout+Ccls, P); at the shipped config
    #           G*P = 128 so every store row is a full, unmasked 128-lane vreg row.
    _, T, P, Cin = x_ref.shape
    G, Cg, _ = wg_ref.shape
    Tm1 = T - 1

    bias_rows = bp_ref[...]                        # (Cg, G*P) f32
    cls_rows = clsp_ref[...].astype(o_ref.dtype)   # (Ccls//G, G*P), identical for every t

    slabs = []
    for t in range(Tm1):                           # static unroll; Tm1 is small
        x_t = x_ref[0, t]                          # (P, Cin)
        # conv[c, p] = sum_k w[c, k] * x[p, k] -> channel-major (NCHW) result directly.
        # G tiny matmuls per t; the lane-axis concat packs the G channel groups side by
        # side so each row is already 128 lanes wide (no in-kernel reshape/relayout).
        # NOTE: K = Cin is tiny (12) so MXU utilization is irrelevant; the kernel is
        # DMA/store bound.  For P % 128 == 0 configs G == 1 and a single dot per t is used.
        groups = [
            lax.dot_general(
                wg_ref[g], x_t,
                dimension_numbers=(((1,), (1,)), ((), ())),
                preferred_element_type=jnp.float32,
            )                                      # (Cg, P)
            for g in range(G)
        ]
        conv_rows = jnp.concatenate(groups, axis=1) if G > 1 else groups[0]   # (Cg, G*P)
        slabs.append((conv_rows + bias_rows).astype(o_ref.dtype))
        slabs.append(cls_rows)                     # class half of the t-slab

    # Single aligned, lane-dense store of the entire per-batch output block.
    o_ref[0] = jnp.concatenate(slabs, axis=0)      # (Tm1*(Cout+Ccls)//G, G*P)


def fused_embed_concat(frames_flat, w_conv, b_conv, cls_img):
    """frames_flat: [B, T, P, Cin] channels-last (P = H*W).
    Returns x_train_flat: [B, T-1, Cout+Ccls, P] (NCHW with pixels flattened on lanes).
    Internally the pallas_call produces a lane-dense [B, rows, G*P] slab whose row-major
    flatten per batch is identical, so the final reshape is free."""
    B, T, P, Cin = frames_flat.shape
    Cout = w_conv.shape[0]
    Ccls = cls_img.shape[0]
    Tm1 = T - 1
    Ctot = Cout + Ccls
    dt = frames_flat.dtype

    # Lane-packing factor: pack G channel rows of width P side by side so output rows are
    # G*P = 128 lanes (unmasked stores + contiguous writeback).  Falls back to G=1 (still
    # correct, just masked stores) for configs where the packing does not divide evenly.
    G = 128 // P if (P < 128 and 128 % P == 0) else 1
    if (Cout % G) or (Ccls % G):
        G = 1
    Cg = Cout // G
    lanes = G * P
    rows = Tm1 * Ctot // G

    # Constant operands pre-packed in the wrapper (tiny one-time XLA ops on parameters):
    #   w_grouped[g, r, :] = w[G*r + g, :]
    w_grouped = jnp.transpose(w_conv.reshape(Cg, G, Cin), (1, 0, 2))                 # (G,Cg,Cin)
    b_packed = jnp.broadcast_to(b_conv.reshape(Cg, G, 1), (Cg, G, P)).reshape(Cg, lanes)
    cls_packed = cls_img.reshape(Ccls // G, lanes).astype(dt)

    out = pl.pallas_call(
        _fused_xtrain_kernel,
        out_shape=jax.ShapeDtypeStruct((B, rows, lanes), dt),
        # One coarse block per batch element: 2 grid steps instead of B*(T-1)=14, so the
        # ~0.35us/step pipeline overhead disappears and the constant operands are fetched
        # once per block.  On v7x ("parallel") each TensorCore takes one batch element;
        # on v5e/v6e the win is purely the coarsening + dense stores.
        grid=(B,),
        in_specs=[
            pl.BlockSpec((1, T, P, Cin), lambda b: (b, 0, 0, 0)),
            pl.BlockSpec((G, Cg, Cin), lambda b: (0, 0, 0)),
            pl.BlockSpec((Cg, lanes), lambda b: (0, 0)),
            pl.BlockSpec((Ccls // G, lanes), lambda b: (0, 0)),
        ],
        out_specs=pl.BlockSpec((1, rows, lanes), lambda b: (b, 0, 0)),
        compiler_params=pltpu.CompilerParams(
            dimension_semantics=("parallel",),
        ),
    )(frames_flat, w_grouped, b_packed, cls_packed)

    # Free reshape: identical row-major element order per batch element.
    return out.reshape(B, Tm1, Ctot, P)


# ---------------------------------------------------------------------------
# Pure-reshape helper from the module (glue, no compute -> plain JAX)
# ---------------------------------------------------------------------------
def reshape_patchback_for_STA(patch_tensor, patch_size):
    # mirrors RNN.reshape_patchback_for_STA
    B, T, ph, pw, C = patch_tensor.shape
    img_c = C // (patch_size * patch_size)
    a = patch_tensor.reshape(B, T, ph, pw, patch_size, patch_size, img_c)
    b = jnp.swapaxes(a, 3, 4)
    img = b.reshape(B, T, ph * patch_size, pw * patch_size, img_c)
    return jnp.transpose(img, (0, 1, 4, 2, 3))  # [B, T, 3, H*ps, W*ps]


# ---------------------------------------------------------------------------
# Forward (module-owned part)
# ---------------------------------------------------------------------------
def rnn_forward(frames_tensor, category, params, configs):
    """frames_tensor: [B, T, Hp, Wp, C] with C = 3*patch_size**2 (PyTorch patch format,
    channels-last).  Returns per-timestep
      x_train = cat([embed_data(frame_t), embed_class(y_gt).view(B,-1,H,W)], dim=1)  (NCHW)
    plus STA_img."""
    B, T, H, W, C = frames_tensor.shape
    ps = configs["patch_size"]

    STA_img = reshape_patchback_for_STA(frames_tensor, ps)

    # ---- embed_class: Linear(num_classes -> 3*img_w*img_w) applied to one-hot(category) ----
    # == column gather + bias; 3*img_w*img_w == C*H*W and .view(B,-1,H,W) is a row-major
    # split, so the (batch-shared) class image is simply:
    # NOTE: assumes one class shared across the batch (matches the PyTorch y_gt tiling).
    cls_img = (params["embed_class_w"][:, category] + params["embed_class_b"]).reshape(C, H * W)
    cls_img = cls_img.astype(frames_tensor.dtype)

    # ---- embed_data weight prep (no .T anywhere in the forward path) ----
    w_conv = params["embed_data_w"][:, :, 0, 0]          # [C_out, C_in]
    b_conv = params["embed_data_b"]                      # [C_out]

    # Free reshape (collapses adjacent contiguous dims, no data movement).  Input stays
    # channels-last as produced by the module; a channel-major producer layout would make
    # the input DMA lane-dense too, but we do not control that layout here.
    frames_flat = frames_tensor.reshape(B, T, H * W, C)

    x_train = fused_embed_concat(frames_flat, w_conv, b_conv, cls_img)
    x_train = x_train.reshape(B, T - 1, 2 * C, H, W)     # free split of the last dim

    # TODO(synk): STANetModel / shared_encoder / latent_encoder / encoder / prior / prior_fp /
    # decoder / head_reconstructor and the SSIM/KLD/BCE losses are undefined submodules in the
    # source module; gen_images, the recurrent loop and the loss terms cannot be reproduced.
    return x_train, STA_img


# ---------------------------------------------------------------------------
# Driver
# ---------------------------------------------------------------------------
if __name__ == "__main__":
    configs = dict(
        batch_size=2,
        total_length=8,
        input_length=4,
        patch_size=2,
        img_width=16,
        num_classes=4,
    )
    B = configs["batch_size"]
    T = configs["total_length"]
    ps = configs["patch_size"]
    img_w = configs["img_width"]
    Hp = Wp = img_w // ps               # patched spatial = 8  (P = 64 pixels)
    C = 3 * ps * ps                     # patched channels = 12
    ncls = configs["num_classes"]

    key = jax.random.PRNGKey(0)
    k1, k2, k3, k4, k5 = jax.random.split(key, 5)

    frames = jax.random.normal(k1, (B, T, Hp, Wp, C), dtype=jnp.float32)
    category = 1

    # Parameter shapes match nn.Linear / nn.Conv2d in __init__.
    params = {
        "embed_class_w": 0.02 * jax.random.normal(k2, (3 * img_w * img_w, ncls), jnp.float32),
        "embed_class_b": 0.01 * jax.random.normal(k3, (3 * img_w * img_w,), jnp.float32),
        "embed_data_w": 0.1 * jax.random.normal(k4, (C, C, 1, 1), jnp.float32),
        "embed_data_b": 0.01 * jax.random.normal(k5, (C,), jnp.float32),
    }

    x_train, sta_img = rnn_forward(frames, category, params, configs)
    x_train = jax.block_until_ready(x_train)
    sta_img = jax.block_until_ready(sta_img)

    # --- reference check (plain JAX, mirrors the PyTorch ops) ---
    y_gt = jnp.tile(jnp.eye(ncls, dtype=jnp.float32)[category][None], (B, 1))
    ref_cls = (y_gt @ params["embed_class_w"].T + params["embed_class_b"]).reshape(B, -1, Hp, Wp)
    x_flat = frames[:, : T - 1].reshape(-1, C)
    ref_in = x_flat @ params["embed_data_w"][:, :, 0, 0].T + params["embed_data_b"]
    ref_in = jnp.transpose(ref_in.reshape(B, T - 1, Hp, Wp, C), (0, 1, 4, 2, 3))
    ref = jnp.concatenate(
        [ref_in, jnp.broadcast_to(ref_cls[:, None], (B, T - 1, ref_cls.shape[1], Hp, Wp))], axis=2
    )

    assert x_train.shape == (B, T - 1, 2 * C, Hp, Wp), x_train.shape
    assert sta_img.shape == (B, T, 3, Hp * ps, Wp * ps), sta_img.shape
    assert jnp.allclose(x_train, ref, atol=1e-5, rtol=1e-5), "mismatch vs reference"

    print("KERNEL_OK")
</pallas_src>

<mosaic_0001>
module attributes {stable_mosaic.version = 11 : i64} {
  func.func @_fused_xtrain_kernel(%arg0: i32, %arg1: memref<1x8x64x12xf32, #tpu.memory_space<vmem>>, %arg2: memref<2x6x12xf32, #tpu.memory_space<vmem>>, %arg3: memref<6x128xf32, #tpu.memory_space<vmem>>, %arg4: memref<6x128xf32, #tpu.memory_space<vmem>>, %arg5: memref<1x84x128xf32, #tpu.memory_space<vmem>>) attributes {dimension_semantics = [#tpu.dimension_semantics<parallel>], iteration_bounds = array<i64: 2>, scalar_prefetch = 0 : i64, scratch_operands = 0 : i64, tpu.core_type = #tpu.core_type<tc>, window_params = [{transform_indices = @transform_0, window_bounds = array<i64: 1, 8, 64, 12>}, {pipeline_mode = #tpu.pipeline_mode<synchronous>, transform_indices = @transform_1, window_bounds = array<i64: 2, 6, 12>}, {pipeline_mode = #tpu.pipeline_mode<synchronous>, transform_indices = @transform_2, window_bounds = array<i64: 6, 128>}, {pipeline_mode = #tpu.pipeline_mode<synchronous>, transform_indices = @transform_3, window_bounds = array<i64: 6, 128>}, {transform_indices = @transform_4, window_bounds = array<i64: 1, 84, 128>}]} {
    %c0 = arith.constant 0 : index
    %c0_0 = arith.constant 0 : index
    %0 = vector.load %arg3[%c0, %c0_0] : memref<6x128xf32, #tpu.memory_space<vmem>>, vector<6x128xf32>
    %c0_1 = arith.constant 0 : index
    %c0_2 = arith.constant 0 : index
    %1 = vector.load %arg4[%c0_1, %c0_2] : memref<6x128xf32, #tpu.memory_space<vmem>>, vector<6x128xf32>
    %c0_3 = arith.constant 0 : index
    %c0_4 = arith.constant 0 : index
    %c0_5 = arith.constant 0 : index
    %c0_6 = arith.constant 0 : index
    %2 = vector.load %arg1[%c0_3, %c0_4, %c0_5, %c0_6] : memref<1x8x64x12xf32, #tpu.memory_space<vmem>>, vector<1x1x64x12xf32>
    %3 = vector.shape_cast %2 : vector<1x1x64x12xf32> to vector<64x12xf32>
    %c0_7 = arith.constant 0 : index
    %c0_8 = arith.constant 0 : index
    %c0_9 = arith.constant 0 : index
    %4 = vector.load %arg2[%c0_7, %c0_8, %c0_9] : memref<2x6x12xf32, #tpu.memory_space<vmem>>, vector<1x6x12xf32>
    %5 = vector.shape_cast %4 : vector<1x6x12xf32> to vector<6x12xf32>
    %cst = arith.constant dense<0.000000e+00> : vector<6x64xf32>
    %6 = tpu.matmul %5, %3, %cst {dimension_numbers = #tpu.dot_dimension_numbers<[1], [1], [0], [0], [0, 0, 1, 0], [], []>} : vector<6x12xf32>, vector<64x12xf32>, vector<6x64xf32> -> vector<6x64xf32>
    %c1 = arith.constant 1 : index
    %c0_10 = arith.constant 0 : index
    %c0_11 = arith.constant 0 : index
    %7 = vector.load %arg2[%c1, %c0_10, %c0_11] : memref<2x6x12xf32, #tpu.memory_space<vmem>>, vector<1x6x12xf32>
    %8 = vector.shape_cast %7 : vector<1x6x12xf32> to vector<6x12xf32>
    %cst_12 = arith.constant dense<0.000000e+00> : vector<6x64xf32>
    %9 = tpu.matmul %8, %3, %cst_12 {dimension_numbers = #tpu.dot_dimension_numbers<[1], [1], [0], [0], [0, 0, 1, 0], [], []>} : vector<6x12xf32>, vector<64x12xf32>, vector<6x64xf32> -> vector<6x64xf32>
    %10 = tpu.concatenate %6, %9 in 1 : vector<6x64xf32>, vector<6x64xf32> -> vector<6x128xf32>
    %11 = arith.addf %10, %0 : vector<6x128xf32>
    %c0_13 = arith.constant 0 : index
    %c1_14 = arith.constant 1 : index
    %c0_15 = arith.constant 0 : index
    %c0_16 = arith.constant 0 : index
    %12 = vector.load %arg1[%c0_13, %c1_14, %c0_15, %c0_16] : memref<1x8x64x12xf32, #tpu.memory_space<vmem>>, vector<1x1x64x12xf32>
    %13 = vector.shape_cast %12 : vector<1x1x64x12xf32> to vector<64x12xf32>
    %c0_17 = arith.constant 0 : index
    %c0_18 = arith.constant 0 : index
    %c0_19 = arith.constant 0 : index
    %14 = vector.load %arg2[%c0_17, %c0_18, %c0_19] : memref<2x6x12xf32, #tpu.memory_space<vmem>>, vector<1x6x12xf32>
    %15 = vector.shape_cast %14 : vector<1x6x12xf32> to vector<6x12xf32>
    %cst_20 = arith.constant dense<0.000000e+00> : vector<6x64xf32>
    %16 = tpu.matmul %15, %13, %cst_20 {dimension_numbers = #tpu.dot_dimension_numbers<[1], [1], [0], [0], [0, 0, 1, 0], [], []>} : vector<6x12xf32>, vector<64x12xf32>, vector<6x64xf32> -> vector<6x64xf32>
    %c1_21 = arith.constant 1 : index
    %c0_22 = arith.constant 0 : index
    %c0_23 = arith.constant 0 : index
    %17 = vector.load %arg2[%c1_21, %c0_22, %c0_23] : memref<2x6x12xf32, #tpu.memory_space<vmem>>, vector<1x6x12xf32>
    %18 = vector.shape_cast %17 : vector<1x6x12xf32> to vector<6x12xf32>
    %cst_24 = arith.constant dense<0.000000e+00> : vector<6x64xf32>
    %19 = tpu.matmul %18, %13, %cst_24 {dimension_numbers = #tpu.dot_dimension_numbers<[1], [1], [0], [0], [0, 0, 1, 0], [], []>} : vector<6x12xf32>, vector<64x12xf32>, vector<6x64xf32> -> vector<6x64xf32>
    %20 = tpu.concatenate %16, %19 in 1 : vector<6x64xf32>, vector<6x64xf32> -> vector<6x128xf32>
    %21 = arith.addf %20, %0 : vector<6x128xf32>
    %c0_25 = arith.constant 0 : index
    %c2 = arith.constant 2 : index
    %c0_26 = arith.constant 0 : index
    %c0_27 = arith.constant 0 : index
    %22 = vector.load %arg1[%c0_25, %c2, %c0_26, %c0_27] : memref<1x8x64x12xf32, #tpu.memory_space<vmem>>, vector<1x1x64x12xf32>
    %23 = vector.shape_cast %22 : vector<1x1x64x12xf32> to vector<64x12xf32>
    %c0_28 = arith.constant 0 : index
    %c0_29 = arith.constant 0 : index
    %c0_30 = arith.constant 0 : index
    %24 = vector.load %arg2[%c0_28, %c0_29, %c0_30] : memref<2x6x12xf32, #tpu.memory_space<vmem>>, vector<1x6x12xf32>
    %25 = vector.shape_cast %24 : vector<1x6x12xf32> to vector<6x12xf32>
    %cst_31 = arith.constant dense<0.000000e+00> : vector<6x64xf32>
    %26 = tpu.matmul %25, %23, %cst_31 {dimension_numbers = #tpu.dot_dimension_numbers<[1], [1], [0], [0], [0, 0, 1, 0], [], []>} : vector<6x12xf32>, vector<64x12xf32>, vector<6x64xf32> -> vector<6x64xf32>
    %c1_32 = arith.constant 1 : index
    %c0_33 = arith.constant 0 : index
    %c0_34 = arith.constant 0 : index
    %27 = vector.load %arg2[%c1_32, %c0_33, %c0_34] : memref<2x6x12xf32, #tpu.memory_space<vmem>>, vector<1x6x12xf32>
    %28 = vector.shape_cast %27 : vector<1x6x12xf32> to vector<6x12xf32>
    %cst_35 = arith.constant dense<0.000000e+00> : vector<6x64xf32>
    %29 = tpu.matmul %28, %23, %cst_35 {dimension_numbers = #tpu.dot_dimension_numbers<[1], [1], [0], [0], [0, 0, 1, 0], [], []>} : vector<6x12xf32>, vector<64x12xf32>, vector<6x64xf32> -> vector<6x64xf32>
    %30 = tpu.concatenate %26, %29 in 1 : vector<6x64xf32>, vector<6x64xf32> -> vector<6x128xf32>
    %31 = arith.addf %30, %0 : vector<6x128xf32>
    %c0_36 = arith.constant 0 : index
    %c3 = arith.constant 3 : index
    %c0_37 = arith.constant 0 : index
    %c0_38 = arith.constant 0 : index
    %32 = vector.load %arg1[%c0_36, %c3, %c0_37, %c0_38] : memref<1x8x64x12xf32, #tpu.memory_space<vmem>>, vector<1x1x64x12xf32>
    %33 = vector.shape_cast %32 : vector<1x1x64x12xf32> to vector<64x12xf32>
    %c0_39 = arith.constant 0 : index
    %c0_40 = arith.constant 0 : index
    %c0_41 = arith.constant 0 : index
    %34 = vector.load %arg2[%c0_39, %c0_40, %c0_41] : memref<2x6x12xf32, #tpu.memory_space<vmem>>, vector<1x6x12xf32>
    %35 = vector.shape_cast %34 : vector<1x6x12xf32> to vector<6x12xf32>
    %cst_42 = arith.constant dense<0.000000e+00> : vector<6x64xf32>
    %36 = tpu.matmul %35, %33, %cst_42 {dimension_numbers = #tpu.dot_dimension_numbers<[1], [1], [0], [0], [0, 0, 1, 0], [], []>} : vector<6x12xf32>, vector<64x12xf32>, vector<6x64xf32> -> vector<6x64xf32>
    %c1_43 = arith.constant 1 : index
    %c0_44 = arith.constant 0 : index
    %c0_45 = arith.constant 0 : index
    %37 = vector.load %arg2[%c1_43, %c0_44, %c0_45] : memref<2x6x12xf32, #tpu.memory_space<vmem>>, vector<1x6x12xf32>
    %38 = vector.shape_cast %37 : vector<1x6x12xf32> to vector<6x12xf32>
    %cst_46 = arith.constant dense<0.000000e+00> : vector<6x64xf32>
    %39 = tpu.matmul %38, %33, %cst_46 {dimension_numbers = #tpu.dot_dimension_numbers<[1], [1], [0], [0], [0, 0, 1, 0], [], []>} : vector<6x12xf32>, vector<64x12xf32>, vector<6x64xf32> -> vector<6x64xf32>
    %40 = tpu.concatenate %36, %39 in 1 : vector<6x64xf32>, vector<6x64xf32> -> vector<6x128xf32>
    %41 = arith.addf %40, %0 : vector<6x128xf32>
    %c0_47 = arith.constant 0 : index
    %c4 = arith.constant 4 : index
    %c0_48 = arith.constant 0 : index
    %c0_49 = arith.constant 0 : index
    %42 = vector.load %arg1[%c0_47, %c4, %c0_48, %c0_49] : memref<1x8x64x12xf32, #tpu.memory_space<vmem>>, vector<1x1x64x12xf32>
    %43 = vector.shape_cast %42 : vector<1x1x64x12xf32> to vector<64x12xf32>
    %c0_50 = arith.constant 0 : index
    %c0_51 = arith.constant 0 : index
    %c0_52 = arith.constant 0 : index
    %44 = vector.load %arg2[%c0_50, %c0_51, %c0_52] : memref<2x6x12xf32, #tpu.memory_space<vmem>>, vector<1x6x12xf32>
    %45 = vector.shape_cast %44 : vector<1x6x12xf32> to vector<6x12xf32>
    %cst_53 = arith.constant dense<0.000000e+00> : vector<6x64xf32>
    %46 = tpu.matmul %45, %43, %cst_53 {dimension_numbers = #tpu.dot_dimension_numbers<[1], [1], [0], [0], [0, 0, 1, 0], [], []>} : vector<6x12xf32>, vector<64x12xf32>, vector<6x64xf32> -> vector<6x64xf32>
    %c1_54 = arith.constant 1 : index
    %c0_55 = arith.constant 0 : index
    %c0_56 = arith.constant 0 : index
    %47 = vector.load %arg2[%c1_54, %c0_55, %c0_56] : memref<2x6x12xf32, #tpu.memory_space<vmem>>, vector<1x6x12xf32>
    %48 = vector.shape_cast %47 : vector<1x6x12xf32> to vector<6x12xf32>
    %cst_57 = arith.constant dense<0.000000e+00> : vector<6x64xf32>
    %49 = tpu.matmul %48, %43, %cst_57 {dimension_numbers = #tpu.dot_dimension_numbers<[1], [1], [0], [0], [0, 0, 1, 0], [], []>} : vector<6x12xf32>, vector<64x12xf32>, vector<6x64xf32> -> vector<6x64xf32>
    %50 = tpu.concatenate %46, %49 in 1 : vector<6x64xf32>, vector<6x64xf32> -> vector<6x128xf32>
    %51 = arith.addf %50, %0 : vector<6x128xf32>
    %c0_58 = arith.constant 0 : index
    %c5 = arith.constant 5 : index
    %c0_59 = arith.constant 0 : index
    %c0_60 = arith.constant 0 : index
    %52 = vector.load %arg1[%c0_58, %c5, %c0_59, %c0_60] : memref<1x8x64x12xf32, #tpu.memory_space<vmem>>, vector<1x1x64x12xf32>
    %53 = vector.shape_cast %52 : vector<1x1x64x12xf32> to vector<64x12xf32>
    %c0_61 = arith.constant 0 : index
    %c0_62 = arith.constant 0 : index
    %c0_63 = arith.constant 0 : index
    %54 = vector.load %arg2[%c0_61, %c0_62, %c0_63] : memref<2x6x12xf32, #tpu.memory_space<vmem>>, vector<1x6x12xf32>
    %55 = vector.shape_cast %54 : vector<1x6x12xf32> to vector<6x12xf32>
    %cst_64 = arith.constant dense<0.000000e+00> : vector<6x64xf32>
    %56 = tpu.matmul %55, %53, %cst_64 {dimension_numbers = #tpu.dot_dimension_numbers<[1], [1], [0], [0], [0, 0, 1, 0], [], []>} : vector<6x12xf32>, vector<64x12xf32>, vector<6x64xf32> -> vector<6x64xf32>
    %c1_65 = arith.constant 1 : index
    %c0_66 = arith.constant 0 : index
    %c0_67 = arith.constant 0 : index
    %57 = vector.load %arg2[%c1_65, %c0_66, %c0_67] : memref<2x6x12xf32, #tpu.memory_space<vmem>>, vector<1x6x12xf32>
    %58 = vector.shape_cast %57 : vector<1x6x12xf32> to vector<6x12xf32>
    %cst_68 = arith.constant dense<0.000000e+00> : vector<6x64xf32>
    %59 = tpu.matmul %58, %53, %cst_68 {dimension_numbers = #tpu.dot_dimension_numbers<[1], [1], [0], [0], [0, 0, 1, 0], [], []>} : vector<6x12xf32>, vector<64x12xf32>, vector<6x64xf32> -> vector<6x64xf32>
    %60 = tpu.concatenate %56, %59 in 1 : vector<6x64xf32>, vector<6x64xf32> -> vector<6x128xf32>
    %61 = arith.addf %60, %0 : vector<6x128xf32>
    %c0_69 = arith.constant 0 : index
    %c6 = arith.constant 6 : index
    %c0_70 = arith.constant 0 : index
    %c0_71 = arith.constant 0 : index
    %62 = vector.load %arg1[%c0_69, %c6, %c0_70, %c0_71] : memref<1x8x64x12xf32, #tpu.memory_space<vmem>>, vector<1x1x64x12xf32>
    %63 = vector.shape_cast %62 : vector<1x1x64x12xf32> to vector<64x12xf32>
    %c0_72 = arith.constant 0 : index
    %c0_73 = arith.constant 0 : index
    %c0_74 = arith.constant 0 : index
    %64 = vector.load %arg2[%c0_72, %c0_73, %c0_74] : memref<2x6x12xf32, #tpu.memory_space<vmem>>, vector<1x6x12xf32>
    %65 = vector.shape_cast %64 : vector<1x6x12xf32> to vector<6x12xf32>
    %cst_75 = arith.constant dense<0.000000e+00> : vector<6x64xf32>
    %66 = tpu.matmul %65, %63, %cst_75 {dimension_numbers = #tpu.dot_dimension_numbers<[1], [1], [0], [0], [0, 0, 1, 0], [], []>} : vector<6x12xf32>, vector<64x12xf32>, vector<6x64xf32> -> vector<6x64xf32>
    %c1_76 = arith.constant 1 : index
    %c0_77 = arith.constant 0 : index
    %c0_78 = arith.constant 0 : index
    %67 = vector.load %arg2[%c1_76, %c0_77, %c0_78] : memref<2x6x12xf32, #tpu.memory_space<vmem>>, vector<1x6x12xf32>
    %68 = vector.shape_cast %67 : vector<1x6x12xf32> to vector<6x12xf32>
    %cst_79 = arith.constant dense<0.000000e+00> : vector<6x64xf32>
    %69 = tpu.matmul %68, %63, %cst_79 {dimension_numbers = #tpu.dot_dimension_numbers<[1], [1], [0], [0], [0, 0, 1, 0], [], []>} : vector<6x12xf32>, vector<64x12xf32>, vector<6x64xf32> -> vector<6x64xf32>
    %70 = tpu.concatenate %66, %69 in 1 : vector<6x64xf32>, vector<6x64xf32> -> vector<6x128xf32>
    %71 = arith.addf %70, %0 : vector<6x128xf32>
    %72 = tpu.concatenate %11, %1, %21, %1, %31, %1, %41, %1, %51, %1, %61, %1, %71, %1 in 0 : vector<6x128xf32>, vector<6x128xf32>, vector<6x128xf32>, vector<6x128xf32>, vector<6x128xf32>, vector<6x128xf32>, vector<6x128xf32>, vector<6x128xf32>, vector<6x128xf32>, vector<6x128xf32>, vector<6x128xf32>, vector<6x128xf32>, vector<6x128xf32>, vector<6x128xf32> -> vector<84x128xf32>
    %c0_80 = arith.constant 0 : index
    %c0_81 = arith.constant 0 : index
    %c0_82 = arith.constant 0 : index
    %73 = vector.load %arg5[%c0_80, %c0_81, %c0_82] : memref<1x84x128xf32, #tpu.memory_space<vmem>>, vector<1x84x128xf32>
    %74 = vector.shape_cast %73 : vector<1x84x128xf32> to vector<84x128xf32>
    %75 = vector.shape_cast %72 : vector<84x128xf32> to vector<1x84x128xf32>
    tpu.vector_store %arg5[%c0_80, %c0_81, %c0_82], %75 {strides = array<i32>} : memref<1x84x128xf32, #tpu.memory_space<vmem>>, vector<1x84x128xf32>,
    return
  }
  func.func @transform_0(%arg0: i32) -> (i32, i32, i32, i32) {
    %c0_i32 = arith.constant 0 : i32
    %c0_i32_0 = arith.constant 0 : i32
    %c0_i32_1 = arith.constant 0 : i32
    %c0_i32_2 = arith.constant 0 : i32
    return %arg0, %c0_i32, %c0_i32_0, %c0_i32_1 : i32, i32, i32, i32
  }
  func.func @transform_1(%arg0: i32) -> (i32, i32, i32) {
    %c0_i32 = arith.constant 0 : i32
    %c0_i32_0 = arith.constant 0 : i32
    %c0_i32_1 = arith.constant 0 : i32
    %c0_i32_2 = arith.constant 0 : i32
    return %c0_i32, %c0_i32_0, %c0_i32_1 : i32, i32, i32
  }
  func.func @transform_2(%arg0: i32) -> (i32, i32) {
    %c0_i32 = arith.constant 0 : i32
    %c0_i32_0 = arith.constant 0 : i32
    %c0_i32_1 = arith.constant 0 : i32
    return %c0_i32, %c0_i32_0 : i32, i32
  }
  func.func @transform_3(%arg0: i32) -> (i32, i32) {
    %c0_i32 = arith.constant 0 : i32
    %c0_i32_0 = arith.constant 0 : i32
    %c0_i32_1 = arith.constant 0 : i32
    return %c0_i32, %c0_i32_0 : i32, i32
  }
  func.func @transform_4(%arg0: i32) -> (i32, i32, i32) {
    %c0_i32 = arith.constant 0 : i32
    %c0_i32_0 = arith.constant 0 : i32
    %c0_i32_1 = arith.constant 0 : i32
    return %arg0, %c0_i32, %c0_i32_0 : i32, i32, i32
  }
}

</mosaic_0001>

<bundles_post_ra>
// kernel: tpu_custom_call.1
= control target key start
LH: loop header
LB: loop body
LE: loop exit
PB: predicated region body
PF: predicated region fallthrough
CT: control target
= control target key end

     0   :  { %s1086_s15 = smov 0   ;;  %s1342_s0 = inlined_call_operand.vmem [shape: f32[2,8,64,12], index: 0, kind: input, shape index: {}]   ;;  %s1343_s1 = inlined_call_operand.vmem [shape: f32[2,6,12], index: 1, kind: input, shape index: {}]   ;;  %s1344_s2 = inlined_call_operand.vmem [shape: f32[6,128], index: 2, kind: input, shape index: {}]   ;;  %s1345_s3 = inlined_call_operand.vmem [shape: f32[6,128], index: 3, kind: input, shape index: {}]   ;;  %s1346_s4 = inlined_call_operand.vmem [shape: f32[2,84,128], index: 4, kind: output, shape index: {}]  }
   0x1 LB: > { %s856_s16 = sadd.s32 4294967295, %s1058_s15   ;;  %p860_p0 = scmp.ge.s32.totalorder %s1058_s15, 1  ;;  %s1058_s15 = sphi %s1086_s15, %s14_s15  }
   0x2   : > { %p162_p1 = scmp.lt.s32.totalorder %s1058_s15, 3 }
   0x4   : > { %p163_p2 = pnand %p860_p0, %p162_p1 }
   0x5   : > { %p188_p3 = scmp.lt.s32.totalorder (!%p163_p2), %s856_s16, 1  ;;  %s1060_s25 = smov (!%p163_p2), 64  }
   0x6   : > { %166 = sbr.rel (%p163_p2) target bundleno = 388 (0x184), region = 36 }
   0xb   : > { %s1348_s16 = smov (!%p188_p3, %s856_s16), 1  ;;  %vm209_vm0 = vcmask 97280   ;;  %v1153_v18 = vld [vmem:[%s1343_s1 + $0x8] sm:$0x3f]  ;;  %v208_v50 = vld [vmem:[%s1343_s1] sm:$0x3f] }
   0xc   : > { %s1041_s17 = sshll.u32 %s1348_s16, 9  ;;  %s1042_s26 = smul.u32 88, %s1348_s16  ;;  %vm286_vm1 = vcmask 523264   ;;  %vm777_vm2 = vcmask 1045504   ;;  %vm779_vm3 = vcmask 1043456   ;;  %vm781_vm4 = vcmask 1041408  }
   0xd   : > { %s1100_s20 = scalar_lea.vmem %s1342_s0, %s1041_s17 }
   0xe   : > { %v207_v0 = vld [vmem:[%s1100_s20 + $0x38] sm:$0xff]  ;;  %v206_v2 = vld [vmem:[%s1100_s20 + $0x30] sm:$0xff]  ;;  %v205_v4 = vld [vmem:[%s1100_s20 + $0x28] sm:$0xff]  ;;  %s1306_s5 = scalar_lea.vmem %s1346_s4, %s1042_s26 }
   0xf   : > { %v890_v1 = vld [vmem:[%s1100_s20 + $0x78] sm:$0xff]  ;;  %874 = vmatpush.xpose.msk.msra.mxu1 %vm209_vm0, %v207_v0  ;;  %v889_v3 = vld [vmem:[%s1100_s20 + $0x70] sm:$0xff]  ;;  %864 = vmatpush.xpose.msk.msra.mxu0 %vm209_vm0, %v207_v0  ;;  %v888_v5 = vld [vmem:[%s1100_s20 + $0x68] sm:$0xff] }
  0x10   : > { %900 = vmatpush.xpose.msk.msra.mxu3 %vm209_vm0, %v890_v1  ;;  %891 = vmatpush.xpose.msk.msra.mxu2 %vm209_vm0, %v890_v1  ;;  %v204_v6 = vld [vmem:[%s1100_s20 + $0x20] sm:$0xff]  ;;  %v203_v8 = vld [vmem:[%s1100_s20 + $0x18] sm:$0xff]  ;;  %v202_v10 = vld [vmem:[%s1100_s20 + $0x10] sm:$0xff] }
  0x11   : > { %v887_v7 = vld [vmem:[%s1100_s20 + $0x60] sm:$0xff]  ;;  %v886_v9 = vld [vmem:[%s1100_s20 + $0x58] sm:$0xff]  ;;  %v885_v11 = vld [vmem:[%s1100_s20 + $0x50] sm:$0xff] }
  0x12   : > { %v201_v12 = vld [vmem:[%s1100_s20 + $0x8] sm:$0xff]  ;;  %v200_v14 = vld [vmem:[%s1100_s20] sm:$0xff]  ;;  %v916_v16 = vld [vmem:[%s1100_s20 + $0xb8] sm:$0xff] }
  0x13   : > { %875 = vmatpush.xpose.msk.msra.mxu1 %vm209_vm0, %v206_v2  ;;  %865 = vmatpush.xpose.msk.msra.mxu0 %vm209_vm0, %v206_v2  ;;  %v884_v13 = vld [vmem:[%s1100_s20 + $0x48] sm:$0xff]  ;;  %v883_v15 = vld [vmem:[%s1100_s20 + $0x40] sm:$0xff]  ;;  %v942_v17 = vld [vmem:[%s1100_s20 + $0xf8] sm:$0xff] }
  0x14   : > { %901 = vmatpush.xpose.msk.msra.mxu3 %vm209_vm0, %v889_v3  ;;  %892 = vmatpush.xpose.msk.msra.mxu2 %vm209_vm0, %v889_v3  ;;  %v915_v19 = vld [vmem:[%s1100_s20 + $0xb0] sm:$0xff]  ;;  %v914_v21 = vld [vmem:[%s1100_s20 + $0xa8] sm:$0xff]  ;;  %v913_v23 = vld [vmem:[%s1100_s20 + $0xa0] sm:$0xff] }
  0x15   : > { %v941_v20 = vld [vmem:[%s1100_s20 + $0xf0] sm:$0xff]  ;;  %v940_v22 = vld [vmem:[%s1100_s20 + $0xe8] sm:$0xff]  ;;  %v939_v24 = vld [vmem:[%s1100_s20 + $0xe0] sm:$0xff] }
  0x16   : > { %v912_v25 = vld [vmem:[%s1100_s20 + $0x98] sm:$0xff]  ;;  %v911_v27 = vld [vmem:[%s1100_s20 + $0x90] sm:$0xff]  ;;  %v910_v29 = vld [vmem:[%s1100_s20 + $0x88] sm:$0xff] }
  0x17   : > { %876 = vmatpush.xpose.msk.msra.mxu1 %vm209_vm0, %v205_v4  ;;  %866 = vmatpush.xpose.msk.msra.mxu0 %vm209_vm0, %v205_v4  ;;  %v938_v26 = vld [vmem:[%s1100_s20 + $0xd8] sm:$0xff]  ;;  %v937_v28 = vld [vmem:[%s1100_s20 + $0xd0] sm:$0xff]  ;;  %v936_v30 = vld [vmem:[%s1100_s20 + $0xc8] sm:$0xff] }
  0x18   : > { %902 = vmatpush.xpose.msk.msra.mxu3 %vm209_vm0, %v888_v5  ;;  %893 = vmatpush.xpose.msk.msra.mxu2 %vm209_vm0, %v888_v5  ;;  %v909_v31 = vld [vmem:[%s1100_s20 + $0x80] sm:$0xff]  ;;  %v968_v33 = vld [vmem:[%s1100_s20 + $0x138] sm:$0xff]  ;;  %v967_v35 = vld [vmem:[%s1100_s20 + $0x130] sm:$0xff] }
  0x19   : > { %v935_v32 = vld [vmem:[%s1100_s20 + $0xc0] sm:$0xff]  ;;  %v994_v34 = vld [vmem:[%s1100_s20 + $0x178] sm:$0xff]  ;;  %v993_v36 = vld [vmem:[%s1100_s20 + $0x170] sm:$0xff] }
  0x1a   : > { %v966_v37 = vld [vmem:[%s1100_s20 + $0x128] sm:$0xff]  ;;  %v965_v39 = vld [vmem:[%s1100_s20 + $0x120] sm:$0xff]  ;;  %v964_v41 = vld [vmem:[%s1100_s20 + $0x118] sm:$0xff] }
  0x1b   : > { %877 = vmatpush.xpose.msk.msra.mxu1 %vm209_vm0, %v204_v6  ;;  %867 = vmatpush.xpose.msk.msra.mxu0 %vm209_vm0, %v204_v6  ;;  %v992_v38 = vld [vmem:[%s1100_s20 + $0x168] sm:$0xff]  ;;  %v991_v40 = vld [vmem:[%s1100_s20 + $0x160] sm:$0xff]  ;;  %v990_v42 = vld [vmem:[%s1100_s20 + $0x158] sm:$0xff] }
  0x1c   : > { %903 = vmatpush.xpose.msk.msra.mxu3 %vm209_vm0, %v887_v7  ;;  %894 = vmatpush.xpose.msk.msra.mxu2 %vm209_vm0, %v887_v7  ;;  %v963_v43 = vld [vmem:[%s1100_s20 + $0x110] sm:$0xff]  ;;  %v962_v45 = vld [vmem:[%s1100_s20 + $0x108] sm:$0xff]  ;;  %v961_v47 = vld [vmem:[%s1100_s20 + $0x100] sm:$0xff] }
  0x1d   : > { %v989_v44 = vld [vmem:[%s1100_s20 + $0x150] sm:$0xff]  ;;  %v988_v46 = vld [vmem:[%s1100_s20 + $0x148] sm:$0xff]  ;;  %v987_v48 = vld [vmem:[%s1100_s20 + $0x140] sm:$0xff] }
  0x1e   : > { %v1020_v49 = vld [vmem:[%s1100_s20 + $0x1b8] sm:$0xff]  ;;  %v1019_v51 = vld [vmem:[%s1100_s20 + $0x1b0] sm:$0xff]  ;;  %v1018_v52 = vld [vmem:[%s1100_s20 + $0x1a8] sm:$0xff] }
  0x1f   : > { %878 = vmatpush.xpose.msk.msra.mxu1 %vm209_vm0, %v203_v8  ;;  %868 = vmatpush.xpose.msk.msra.mxu0 %vm209_vm0, %v203_v8  ;;  %v1017_v53 = vld [vmem:[%s1100_s20 + $0x1a0] sm:$0xff]  ;;  %v1016_v54 = vld [vmem:[%s1100_s20 + $0x198] sm:$0xff]  ;;  %v1015_v55 = vld [vmem:[%s1100_s20 + $0x190] sm:$0xff] }
  0x20   : > { %904 = vmatpush.xpose.msk.msra.mxu3 %vm209_vm0, %v886_v9  ;;  %895 = vmatpush.xpose.msk.msra.mxu2 %vm209_vm0, %v886_v9  ;;  %v1014_v56 = vld [vmem:[%s1100_s20 + $0x188] sm:$0xff]  ;;  %v1013_v57 = vld [vmem:[%s1100_s20 + $0x180] sm:$0xff] }
  0x21   : > { %v199_v1 = vld [vmem:[%s1345_s3] sm:$0x3f] }
  0x22   : > { %v764_v2 = vrot.slane %v199_v1, 2  ;;  %v198_v5 = vld [vmem:[%s1344_s2] sm:$0x3f] }
  0x23   : > { %879 = vmatpush.xpose.msk.msra.mxu1 %vm209_vm0, %v202_v10  ;;  %869 = vmatpush.xpose.msk.msra.mxu0 %vm209_vm0, %v202_v10 }
  0x24   : > { %905 = vmatpush.xpose.msk.msra.mxu3 %vm209_vm0, %v885_v11  ;;  %896 = vmatpush.xpose.msk.msra.mxu2 %vm209_vm0, %v885_v11  ;;  %800 = vst [vmem:[%s1306_s5 + $0x50] sm:$0xf] %v764_v2 }
  0x27   : > { %880 = vmatpush.xpose.msk.msra.mxu1 %vm209_vm0, %v201_v12  ;;  %870 = vmatpush.xpose.msk.msra.mxu0 %vm209_vm0, %v201_v12 }
  0x28   : > { %906 = vmatpush.xpose.msk.msra.mxu3 %vm209_vm0, %v884_v13  ;;  %897 = vmatpush.xpose.msk.msra.mxu2 %vm209_vm0, %v884_v13  ;;  %v769_v13 = vrot.slane %v199_v1, 6 }
  0x2b   : > { %881 = vmatpush.xpose.msk.msra.mxu1 %vm209_vm0, %v200_v14  ;;  %871 = vmatpush.xpose.msk.msra.mxu0 %vm209_vm0, %v200_v14 }
  0x2c   : > { %907 = vmatpush.xpose.msk.msra.mxu3 %vm209_vm0, %v883_v15  ;;  %898 = vmatpush.xpose.msk.msra.mxu2 %vm209_vm0, %v883_v15 }
  0x2e   : > { %882 = vmatmul.msk.f32.vlgmr.msra.gmra.mxu1 %vm209_vm0, %v1153_v18  ;;  %872 = vmatmul.msk.f32.vlgmr.msra.gmra.mxu0 %vm209_vm0, %v208_v50 }
  0x2f   : > { %926 = vmatpush.xpose.msk.msrb.mxu1 %vm209_vm0, %v916_v16  ;;  %908 = vmatmul.msk.f32.vlgmr.msra.gmra.mxu3 %vm209_vm0, %v1153_v18 }
  0x30   : > { %952 = vmatpush.xpose.msk.msrb.mxu3 %vm209_vm0, %v942_v17  ;;  %917 = vmatpush.xpose.msk.msrb.mxu0 %vm209_vm0, %v916_v16 }
  0x31   : > { %943 = vmatpush.xpose.msk.msrb.mxu2 %vm209_vm0, %v942_v17 }
  0x32   : > { %899 = vmatmul.msk.f32.vlgmr.msra.gmra.mxu2 %vm209_vm0, %v208_v50 }
  0x33   : > { %927 = vmatpush.xpose.msk.msrb.mxu1 %vm209_vm0, %v915_v19 }
  0x34   : > { %953 = vmatpush.xpose.msk.msrb.mxu3 %vm209_vm0, %v941_v20  ;;  %918 = vmatpush.xpose.msk.msrb.mxu0 %vm209_vm0, %v915_v19 }
  0x35   : > { %944 = vmatpush.xpose.msk.msrb.mxu2 %vm209_vm0, %v941_v20 }
  0x37   : > { %928 = vmatpush.xpose.msk.msrb.mxu1 %vm209_vm0, %v914_v21 }
  0x38   : > { %954 = vmatpush.xpose.msk.msrb.mxu3 %vm209_vm0, %v940_v22  ;;  %919 = vmatpush.xpose.msk.msrb.mxu0 %vm209_vm0, %v914_v21 }
  0x39   : > { %945 = vmatpush.xpose.msk.msrb.mxu2 %vm209_vm0, %v940_v22 }
  0x3b   : > { %929 = vmatpush.xpose.msk.msrb.mxu1 %vm209_vm0, %v913_v23 }
  0x3c   : > { %955 = vmatpush.xpose.msk.msrb.mxu3 %vm209_vm0, %v939_v24  ;;  %920 = vmatpush.xpose.msk.msrb.mxu0 %vm209_vm0, %v913_v23 }
  0x3d   : > { %946 = vmatpush.xpose.msk.msrb.mxu2 %vm209_vm0, %v939_v24 }
  0x3f   : > { %930 = vmatpush.xpose.msk.msrb.mxu1 %vm209_vm0, %v912_v25 }
  0x40   : > { %956 = vmatpush.xpose.msk.msrb.mxu3 %vm209_vm0, %v938_v26  ;;  %921 = vmatpush.xpose.msk.msrb.mxu0 %vm209_vm0, %v912_v25 }
  0x41   : > { %947 = vmatpush.xpose.msk.msrb.mxu2 %vm209_vm0, %v938_v26 }
  0x43   : > { %931 = vmatpush.xpose.msk.msrb.mxu1 %vm209_vm0, %v911_v27 }
  0x44   : > { %957 = vmatpush.xpose.msk.msrb.mxu3 %vm209_vm0, %v937_v28  ;;  %922 = vmatpush.xpose.msk.msrb.mxu0 %vm209_vm0, %v911_v27 }
  0x45   : > { %948 = vmatpush.xpose.msk.msrb.mxu2 %vm209_vm0, %v937_v28 }
  0x47   : > { %932 = vmatpush.xpose.msk.msrb.mxu1 %vm209_vm0, %v910_v29 }
  0x48   : > { %958 = vmatpush.xpose.msk.msrb.mxu3 %vm209_vm0, %v936_v30  ;;  %923 = vmatpush.xpose.msk.msrb.mxu0 %vm209_vm0, %v910_v29 }
  0x49   : > { %949 = vmatpush.xpose.msk.msrb.mxu2 %vm209_vm0, %v936_v30 }
  0x4b   : > { %933 = vmatpush.xpose.msk.msrb.mxu1 %vm209_vm0, %v909_v31 }
  0x4c   : > { %959 = vmatpush.xpose.msk.msrb.mxu3 %vm209_vm0, %v935_v32  ;;  %924 = vmatpush.xpose.msk.msrb.mxu0 %vm209_vm0, %v909_v31 }
  0x4d   : > { %950 = vmatpush.xpose.msk.msrb.mxu2 %vm209_vm0, %v935_v32 }
  0x4e   : > { %934 = vmatmul.msk.f32.vlgmr.msrb.gmra.mxu1 %vm209_vm0, %v1153_v18 }
  0x4f   : > { %978 = vmatpush.xpose.msk.msra.mxu1 %vm209_vm0, %v968_v33  ;;  %960 = vmatmul.msk.f32.vlgmr.msrb.gmra.mxu3 %vm209_vm0, %v1153_v18 }
  0x50   : > { %1004 = vmatpush.xpose.msk.msra.mxu3 %vm209_vm0, %v994_v34  ;;  %969 = vmatpush.xpose.msk.msra.mxu0 %vm209_vm0, %v968_v33 }
  0x51   : > { %995 = vmatpush.xpose.msk.msra.mxu2 %vm209_vm0, %v994_v34  ;;  %925 = vmatmul.msk.f32.vlgmr.msrb.gmra.mxu0 %vm209_vm0, %v208_v50 }
  0x52   : > { %951 = vmatmul.msk.f32.vlgmr.msrb.gmra.mxu2 %vm209_vm0, %v208_v50 }
  0x53   : > { %979 = vmatpush.xpose.msk.msra.mxu1 %vm209_vm0, %v967_v35 }
  0x54   : > { %1005 = vmatpush.xpose.msk.msra.mxu3 %vm209_vm0, %v993_v36  ;;  %970 = vmatpush.xpose.msk.msra.mxu0 %vm209_vm0, %v967_v35 }
  0x55   : > { %996 = vmatpush.xpose.msk.msra.mxu2 %vm209_vm0, %v993_v36 }
  0x57   : > { %980 = vmatpush.xpose.msk.msra.mxu1 %vm209_vm0, %v966_v37 }
  0x58   : > { %1006 = vmatpush.xpose.msk.msra.mxu3 %vm209_vm0, %v992_v38  ;;  %971 = vmatpush.xpose.msk.msra.mxu0 %vm209_vm0, %v966_v37 }
  0x59   : > { %997 = vmatpush.xpose.msk.msra.mxu2 %vm209_vm0, %v992_v38 }
  0x5b   : > { %981 = vmatpush.xpose.msk.msra.mxu1 %vm209_vm0, %v965_v39 }
  0x5c   : > { %1007 = vmatpush.xpose.msk.msra.mxu3 %vm209_vm0, %v991_v40  ;;  %972 = vmatpush.xpose.msk.msra.mxu0 %vm209_vm0, %v965_v39 }
  0x5d   : > { %998 = vmatpush.xpose.msk.msra.mxu2 %vm209_vm0, %v991_v40 }
  0x5f   : > { %982 = vmatpush.xpose.msk.msra.mxu1 %vm209_vm0, %v964_v41 }
  0x60   : > { %1008 = vmatpush.xpose.msk.msra.mxu3 %vm209_vm0, %v990_v42  ;;  %973 = vmatpush.xpose.msk.msra.mxu0 %vm209_vm0, %v964_v41 }
  0x61   : > { %999 = vmatpush.xpose.msk.msra.mxu2 %vm209_vm0, %v990_v42 }
  0x63   : > { %983 = vmatpush.xpose.msk.msra.mxu1 %vm209_vm0, %v963_v43 }
  0x64   : > { %1009 = vmatpush.xpose.msk.msra.mxu3 %vm209_vm0, %v989_v44  ;;  %974 = vmatpush.xpose.msk.msra.mxu0 %vm209_vm0, %v963_v43 }
  0x65   : > { %1000 = vmatpush.xpose.msk.msra.mxu2 %vm209_vm0, %v989_v44 }
  0x67   : > { %984 = vmatpush.xpose.msk.msra.mxu1 %vm209_vm0, %v962_v45 }
  0x68   : > { %1010 = vmatpush.xpose.msk.msra.mxu3 %vm209_vm0, %v988_v46  ;;  %975 = vmatpush.xpose.msk.msra.mxu0 %vm209_vm0, %v962_v45 }
  0x69   : > { %1001 = vmatpush.xpose.msk.msra.mxu2 %vm209_vm0, %v988_v46 }
  0x6b   : > { %985 = vmatpush.xpose.msk.msra.mxu1 %vm209_vm0, %v961_v47 }
  0x6c   : > { %1011 = vmatpush.xpose.msk.msra.mxu3 %vm209_vm0, %v987_v48  ;;  %976 = vmatpush.xpose.msk.msra.mxu0 %vm209_vm0, %v961_v47 }
  0x6d   : > { %1002 = vmatpush.xpose.msk.msra.mxu2 %vm209_vm0, %v987_v48 }
  0x6e   : > { %986 = vmatmul.msk.f32.vlgmr.msra.gmra.mxu1 %vm209_vm0, %v1153_v18 }
  0x6f   : > { %1030 = vmatpush.xpose.msk.msrb.mxu1 %vm209_vm0, %v1020_v49  ;;  %1012 = vmatmul.msk.f32.vlgmr.msra.gmra.mxu3 %vm209_vm0, %v1153_v18 }
  0x70   : > { %1021 = vmatpush.xpose.msk.msrb.mxu0 %vm209_vm0, %v1020_v49  ;;  %1003 = vmatmul.msk.f32.vlgmr.msra.gmra.mxu2 %vm209_vm0, %v208_v50 }
  0x71   : > { %977 = vmatmul.msk.f32.vlgmr.msra.gmra.mxu0 %vm209_vm0, %v208_v50 }
  0x73   : > { %1031 = vmatpush.xpose.msk.msrb.mxu1 %vm209_vm0, %v1019_v51 }
  0x74   : > { %1022 = vmatpush.xpose.msk.msrb.mxu0 %vm209_vm0, %v1019_v51 }
  0x77   : > { %1032 = vmatpush.xpose.msk.msrb.mxu1 %vm209_vm0, %v1018_v52 }
  0x78   : > { %1023 = vmatpush.xpose.msk.msrb.mxu0 %vm209_vm0, %v1018_v52 }
  0x7b   : > { %1033 = vmatpush.xpose.msk.msrb.mxu1 %vm209_vm0, %v1017_v53 }
  0x7c   : > { %1024 = vmatpush.xpose.msk.msrb.mxu0 %vm209_vm0, %v1017_v53 }
  0x7f   : > { %1034 = vmatpush.xpose.msk.msrb.mxu1 %vm209_vm0, %v1016_v54 }
  0x80   : > { %1025 = vmatpush.xpose.msk.msrb.mxu0 %vm209_vm0, %v1016_v54 }
  0x83   : > { %1035 = vmatpush.xpose.msk.msrb.mxu1 %vm209_vm0, %v1015_v55 }
  0x84   : > { %1026 = vmatpush.xpose.msk.msrb.mxu0 %vm209_vm0, %v1015_v55 }
  0x87   : > { %1036 = vmatpush.xpose.msk.msrb.mxu1 %vm209_vm0, %v1014_v56 }
  0x88   : > { %1027 = vmatpush.xpose.msk.msrb.mxu0 %vm209_vm0, %v1014_v56 }
  0x8b   : > { %1037 = vmatpush.xpose.msk.msrb.mxu1 %vm209_vm0, %v1013_v57 }
  0x8c   : > { %1028 = vmatpush.xpose.msk.msrb.mxu0 %vm209_vm0, %v1013_v57 }
  0x8e   : > { %1038 = vmatmul.msk.f32.vlgmr.msrb.gmra.mxu1 %vm209_vm0, %v1153_v18 }
  0x8f   : > { %1029 = vmatmul.msk.f32.vlgmr.msrb.gmra.mxu0 %vm209_vm0, %v208_v50 }
  0xab   : > { %v279_v59 = vpop.f32.mrf.mxu1  ;;  %v254_v3 = vpop.f32.mrf.mxu0 }
  0xb2   : > { %v359_v58 = vpop.f32.mrf.mxu3 }
  0xb3   : > { %363 = vrot.lane.b32.xlu0 %v359_v58, %s1060_s25 }
  0xb5   : > { %v339_v6 = vpop.f32.mrf.mxu2 }
  0xcb   : > { %v438_v60 = vpop.f32.mrf.mxu1 }
  0xcc   : > { %442 = vrot.lane.b32.xlu2 %v438_v60, %s1060_s25 }
  0xce   : > { %v418_v4 = vpop.f32.mrf.mxu0 }
  0xd2   : > { %v517_v61 = vpop.f32.mrf.mxu3 }
  0xd3   : > { %521 = vrot.lane.b32.xlu0 %v517_v61, %s1060_s25 }
  0xd5   : > { %v497_v19 = vpop.f32.mrf.mxu2 }
  0xeb   : > { %v596_v62 = vpop.f32.mrf.mxu1 }
  0xec   : > { %600 = vrot.lane.b32.xlu2 %v596_v62, %s1060_s25 }
  0xee   : > { %v576_v18 = vpop.f32.mrf.mxu0 }
  0xf2   : > { %v675_v63 = vpop.f32.mrf.mxu3 }
  0xf3   : > { %679 = vrot.lane.b32.xlu1 %v675_v63, %s1060_s25  ;;  %v655_v30 = vpop.f32.mrf.mxu2 }
  0xfb   : > { %283 = vrot.lane.b32.xlu1 %v279_v59, %s1060_s25 }
 0x10b   : > { %v754_v0 = vpop.f32.mrf.mxu1 }
 0x10c   : > { %758 = vrot.lane.b32.xlu0 %v754_v0, %s1060_s25  ;;  %v734_v41 = vpop.f32.mrf.mxu0 }
 0x125   : > { %v364_v9 = vpop.permute.xlu0 %363 }
 0x126   : > { %v443_v7 = vpop.permute.xlu2 %442  ;;  %v366_v11 = vsel %vm286_vm1, %v339_v6, %v364_v9 }
 0x127   : > { %v445_v8 = vsel %vm286_vm1, %v418_v4, %v443_v7  ;;  %v367_v12 = vadd.f32 %v366_v11, %v198_v5 }
 0x128   : > { %v446_v10 = vadd.f32 %v445_v8, %v198_v5 }
 0x129   : > { %v767_v15 = vrot.slane %v367_v12, 4 }
 0x12a   : > { %v783_v14 = vsel %vm777_vm2, %v446_v10, %v764_v2 }
 0x12b   : > { %793 = vst [vmem:[%s1306_s5 + $0x18] sm:$0xff] %v783_v14  ;;  %v780_v16 = vsel %vm779_vm3, %v764_v2, %v767_v15  ;;  %v782_v17 = vsel %vm781_vm4, %v767_v15, %v769_v13 }
 0x12c   : > { %791 = vst [vmem:[%s1306_s5 + $0x8] sm:$0xff] %v780_v16 }
 0x12d   : > { %792 = vst [vmem:[%s1306_s5 + $0x10] sm:$0xff] %v782_v17 }
 0x145   : > { %v522_v22 = vpop.permute.xlu0 %521 }
 0x146   : > { %v601_v20 = vpop.permute.xlu2 %600  ;;  %v524_v24 = vsel %vm286_vm1, %v497_v19, %v522_v22 }
 0x147   : > { %v603_v21 = vsel %vm286_vm1, %v576_v18, %v601_v20  ;;  %v525_v25 = vadd.f32 %v524_v24, %v198_v5 }
 0x148   : > { %v604_v23 = vadd.f32 %v603_v21, %v198_v5 }
 0x149   : > { %v772_v27 = vrot.slane %v525_v25, 4 }
 0x14a   : > { %v786_v26 = vsel %vm777_vm2, %v604_v23, %v764_v2 }
 0x14b   : > { %796 = vst [vmem:[%s1306_s5 + $0x30] sm:$0xff] %v786_v26  ;;  %v784_v28 = vsel %vm779_vm3, %v764_v2, %v772_v27  ;;  %v785_v29 = vsel %vm781_vm4, %v772_v27, %v769_v13 }
 0x14c   : > { %794 = vst [vmem:[%s1306_s5 + $0x20] sm:$0xff] %v784_v28 }
 0x14d   : > { %795 = vst [vmem:[%s1306_s5 + $0x28] sm:$0xff] %v785_v29 }
 0x165   : > { %v680_v31 = vpop.permute.xlu1 %679 }
 0x166   : > { %v682_v32 = vsel %vm286_vm1, %v655_v30, %v680_v31 }
 0x167   : > { %v683_v33 = vadd.f32 %v682_v32, %v198_v5 }
 0x169   : > { %v775_v34 = vrot.slane %v683_v33, 4 }
 0x16b   : > { %v787_v35 = vsel %vm779_vm3, %v764_v2, %v775_v34  ;;  %v788_v36 = vsel %vm781_vm4, %v775_v34, %v769_v13 }
 0x16c   : > { %797 = vst [vmem:[%s1306_s5 + $0x38] sm:$0xff] %v787_v35 }
 0x16d   : > { %v284_v37 = vpop.permute.xlu1 %283  ;;  %798 = vst [vmem:[%s1306_s5 + $0x40] sm:$0xff] %v788_v36 }
 0x16e   : > { %v287_v38 = vsel %vm286_vm1, %v254_v3, %v284_v37 }
 0x16f   : > { %v288_v39 = vadd.f32 %v287_v38, %v198_v5 }
 0x171   : > { %v778_v40 = vsel %vm777_vm2, %v288_v39, %v764_v2 }
 0x172   : > { %790 = vst [vmem:[%s1306_s5] sm:$0xff] %v778_v40 }
 0x17e   : > { %v759_v42 = vpop.permute.xlu0 %758 }
 0x17f   : > { %v761_v43 = vsel %vm286_vm1, %v734_v41, %v759_v42 }
 0x180   : > { %v762_v44 = vadd.f32 %v761_v43, %v198_v5 }
 0x182   : > { %v789_v45 = vsel %vm777_vm2, %v762_v44, %v764_v2 }
 0x183   : > { %799 = vst [vmem:[%s1306_s5 + $0x48] sm:$0xff] %v789_v45 }
 0x184 PF: > { %s14_s15 = sadd.s32 1, %s1058_s15  }
 0x185   : > { %p11_p4 = scmp.ge.s32.totalorder %s14_s15, 4  }
 0x187   :  { %13 = sbr.rel (!%p11_p4) target bundleno = 1 (0x1), region = 73 }

</bundles_post_ra>
